<compile_context>
chip_gen: v6e
topology: v6e:2x2x1
jax: 0.10.0
libtpu: 0.0.40
codegen_flags: <defaults>
</compile_context>

<pallas_src>
import functools
import math

import jax
import jax.numpy as jnp
from jax.experimental import pallas as pl
from jax.experimental.pallas import tpu as pltpu

EPS = 1e-5


# --------------------------------------------------------------------------- #
# Hardware-aware budgets
# --------------------------------------------------------------------------- #
def _hw_budgets():
    """Generation-aware VMEM limit and block budgets (bytes)."""
    cap = None
    try:
        info = pltpu.get_tpu_info()
        cap = getattr(info, "vmem_capacity_bytes", None)
    except Exception:
        cap = None
    if cap is None:
        cap = 64 * 1024 * 1024  # unknown -> assume the smallest (v7x-class)
    if cap <= 64 * 1024 * 1024:
        # v7x-class: 64 MiB physical VMEM -> keep in+out double-buffered blocks
        # plus f32 temporaries comfortably under a 48 MiB scoped limit.
        return dict(vmem_limit=48 << 20, block_bytes=6 << 20, fused_slab=4 << 20)
    # v5e / v6e: 128 MiB physical VMEM.
    return dict(vmem_limit=96 << 20, block_bytes=8 << 20, fused_slab=10 << 20)


# --------------------------------------------------------------------------- #
# Tiling helpers
# --------------------------------------------------------------------------- #
def _pick_fused_f_tile(n, f, itemsize, slab_budget):
    """Largest lane-dense F tile whose (N, f_tile) slab fits the fused budget.

    Prefers >=2 F tiles when a lane-dense split exists (megacore on v7x).
    Returns None when no tile fits (-> streaming two-pass path).
    """
    cands = [d for d in range(128, f, 128) if f % d == 0] + [f]
    fitting = [d for d in cands if n * d * itemsize <= slab_budget]
    if not fitting:
        return None
    f_tile = max(fitting)
    if f // f_tile < 2:
        smaller = [d for d in fitting if d != f and f // d >= 2]
        if smaller:
            f_tile = max(smaller)
    return f_tile


def _fold_factor(n, f):
    """Smallest k with (k*f) % 128 == 0 and n % k == 0 (1 if not foldable)."""
    if f >= 128:
        return 1
    k = 128 // math.gcd(f, 128)
    if k <= 1 or n % k != 0:
        return 1
    return k


def _choose_tiles(n, f, itemsize, block_bytes, max_rows=None):
    """(n_tile, f_tile) for the streaming path: lane-dense, VMEM-bounded,
    dtype-aware sublane rounding, full-width rows when they fit the budget."""
    row_unit = 8 * max(1, 4 // max(1, itemsize))  # 8 (f32), 16 (bf16), 32 (i8)

    # Keep full-width rows (one contiguous DMA per row) whenever a >=256-row
    # tile still fits the byte budget, or F cannot be split lane-dense.
    if f % 128 != 0 or 256 * f * itemsize <= block_bytes:
        f_tile = f
    else:
        f_tile = 128
        for cand in (8192, 4096, 2048, 1024, 512, 256, 128):
            if f % cand == 0 and 256 * cand * itemsize <= block_bytes:
                f_tile = cand
                break

    if n <= row_unit:
        return n, f_tile

    rows_budget = max(row_unit, block_bytes // max(1, f_tile * itemsize))
    n_tile = min(n, rows_budget)
    if max_rows is not None:
        n_tile = min(n_tile, max(row_unit, max_rows))
    if n_tile < n:
        n_tile = max(row_unit, (n_tile // row_unit) * row_unit)
    return n_tile, f_tile


def _pick_chunks(total_tiles):
    """Two N-chunks (parallel axis for megacore) when the tile count is even."""
    if total_tiles >= 2 and total_tiles % 2 == 0:
        return 2, total_tiles // 2
    return 1, total_tiles


# --------------------------------------------------------------------------- #
# Kernels
# --------------------------------------------------------------------------- #
def _fused_kernel(x_ref, gamma_ref, beta_ref, o_ref, *, inv_n, eps):
    """Whole-column-slab resident in VMEM: stats + normalize in one pass."""
    x = x_ref[...].astype(jnp.float32)
    mean = jnp.sum(x, axis=0, keepdims=True) * inv_n
    xc = x - mean
    var = jnp.sum(xc * xc, axis=0, keepdims=True) * inv_n  # centered (robust)
    scale = gamma_ref[...] * jax.lax.rsqrt(var + eps)
    o_ref[...] = (xc * scale + beta_ref[...]).astype(o_ref.dtype)


def _stats_kernel(x_ref, psum_ref, psq_ref, *, n_rows, n_tile, nc, nn):
    """Partial (sum, sum(x^2)) per N-chunk; reduction over trailing axis."""
    c = pl.program_id(0)
    k = pl.program_id(2)

    @pl.when(k == 0)
    def _():
        psum_ref[...] = jnp.zeros_like(psum_ref)
        psq_ref[...] = jnp.zeros_like(psq_ref)

    x = x_ref[...].astype(jnp.float32)

    def accumulate(xv):
        psum_ref[...] += jnp.sum(xv, axis=0, keepdims=True)[None]
        psq_ref[...] += jnp.sum(xv * xv, axis=0, keepdims=True)[None]

    if n_rows % n_tile == 0:
        accumulate(x)
    else:
        # Only the single (globally last) tile is partial -> mask only there.
        valid = n_rows - (nc * nn - 1) * n_tile
        is_last = jnp.logical_and(c == nc - 1, k == nn - 1)

        @pl.when(jnp.logical_not(is_last))
        def _():
            accumulate(x)

        @pl.when(is_last)
        def _():
            row = jax.lax.broadcasted_iota(jnp.int32, x.shape, 0)
            accumulate(jnp.where(row < valid, x, 0.0))


def _norm_kernel(x_ref, scale_ref, shift_ref, o_ref):
    """Streaming FMA: y = x*scale + shift (scale/shift broadcast over rows)."""
    y = x_ref[...].astype(jnp.float32) * scale_ref[...] + shift_ref[...]
    o_ref[...] = y.astype(o_ref.dtype)


# --------------------------------------------------------------------------- #
# pallas_call wrappers
# --------------------------------------------------------------------------- #
def _bn_fused(x2d, gamma2d, beta2d, f_tile, vmem_limit):
    n, f = x2d.shape
    nf = f // f_tile
    kernel = functools.partial(_fused_kernel, inv_n=1.0 / n, eps=EPS)
    return pl.pallas_call(
        kernel,
        out_shape=jax.ShapeDtypeStruct((n, f), x2d.dtype),
        grid_spec=pltpu.PrefetchScalarGridSpec(
            num_scalar_prefetch=0,
            grid=(nf,),
            in_specs=[
                pl.BlockSpec((n, f_tile), lambda j: (0, j)),
                pl.BlockSpec((1, f_tile), lambda j: (0, j)),
                pl.BlockSpec((1, f_tile), lambda j: (0, j)),
            ],
            out_specs=pl.BlockSpec((n, f_tile), lambda j: (0, j)),
        ),
        compiler_params=pltpu.CompilerParams(
            dimension_semantics=("parallel",),
            vmem_limit_bytes=vmem_limit),
    )(x2d, gamma2d, beta2d)


def _stats_pass(xw, n_tile, f_tile, vmem_limit):
    nw, fw = xw.shape
    nf = fw // f_tile
    total_tiles = pl.cdiv(nw, n_tile)
    nc, nn = _pick_chunks(total_tiles)
    kernel = functools.partial(
        _stats_kernel, n_rows=nw, n_tile=n_tile, nc=nc, nn=nn)
    psum, psq = pl.pallas_call(
        kernel,
        out_shape=(jax.ShapeDtypeStruct((nc, 1, fw), jnp.float32),
                   jax.ShapeDtypeStruct((nc, 1, fw), jnp.float32)),
        grid_spec=pltpu.PrefetchScalarGridSpec(
            num_scalar_prefetch=0,
            grid=(nc, nf, nn),
            in_specs=[
                pl.BlockSpec((n_tile, f_tile), lambda c, j, k: (c * nn + k, j)),
            ],
            out_specs=[
                pl.BlockSpec((1, 1, f_tile), lambda c, j, k: (c, 0, j)),
                pl.BlockSpec((1, 1, f_tile), lambda c, j, k: (c, 0, j)),
            ],
        ),
        compiler_params=pltpu.CompilerParams(
            dimension_semantics=("parallel", "parallel", "arbitrary"),
            vmem_limit_bytes=vmem_limit),
    )(xw)
    return psum, psq


def _normalize_pass(xw, scale_w, shift_w, n_tile, f_tile, vmem_limit):
    nw, fw = xw.shape
    nf = fw // f_tile
    nn = pl.cdiv(nw, n_tile)
    return pl.pallas_call(
        _norm_kernel,
        out_shape=jax.ShapeDtypeStruct((nw, fw), xw.dtype),
        grid_spec=pltpu.PrefetchScalarGridSpec(
            num_scalar_prefetch=0,
            grid=(nf, nn),
            in_specs=[
                pl.BlockSpec((n_tile, f_tile), lambda j, i: (i, j)),
                pl.BlockSpec((1, f_tile), lambda j, i: (0, j)),
                pl.BlockSpec((1, f_tile), lambda j, i: (0, j)),
            ],
            out_specs=pl.BlockSpec((n_tile, f_tile), lambda j, i: (i, j)),
        ),
        compiler_params=pltpu.CompilerParams(
            dimension_semantics=("parallel", "parallel"),
            vmem_limit_bytes=vmem_limit),
    )(xw, scale_w, shift_w)


# --------------------------------------------------------------------------- #
# Driver
# --------------------------------------------------------------------------- #
def _bn_2d(x2d, gamma, beta, *, vmem_limit, block_bytes, fused_slab,
           max_rows=None):
    """Batch-norm over rows of a (N, F) array, per-feature stats (training)."""
    n, f = x2d.shape
    itemsize = x2d.dtype.itemsize
    gamma2d = gamma.astype(jnp.float32).reshape(1, f)
    beta2d = beta.astype(jnp.float32).reshape(1, f)

    fold = _fold_factor(n, f)

    # ---- Fused path: whole column slab resident in VMEM (1 read + 1 write) --
    if max_rows is None:
        f_tile = _pick_fused_f_tile(n, f, itemsize, fused_slab)
        # For tiny F with large N prefer the lane-folded streaming path
        # (lane-dense stores beat the extra read).
        if f_tile is not None and not (fold > 1 and n >= 4096):
            return _bn_fused(x2d, gamma2d, beta2d, f_tile, vmem_limit)

    # ---- Streaming two-pass path -------------------------------------------
    nw, fw = n // fold, f * fold
    xw = x2d.reshape(nw, fw) if fold > 1 else x2d

    n_tile, f_tile = _choose_tiles(nw, fw, itemsize, block_bytes,
                                   max_rows=max_rows)

    # Pass 1: chunked partial sums (both cores participate when possible).
    psum, psq = _stats_pass(xw, n_tile, f_tile, vmem_limit)

    # Tiny plain-JAX finalize: combine chunk/fold partials -> scale/shift.
    total_sum = psum.reshape(-1, f).sum(axis=0)
    total_sq = psq.reshape(-1, f).sum(axis=0)
    inv_n = 1.0 / n
    mean = total_sum * inv_n
    # TODO(synk): E[x^2]-mean^2 in f32 can lose precision when |mean| >> std
    # (clamped >= 0); the fused path uses centered variance instead.
    var = jnp.maximum(total_sq * inv_n - mean * mean, 0.0)
    scale = gamma.astype(jnp.float32).reshape(f) * jax.lax.rsqrt(var + EPS)
    shift = beta.astype(jnp.float32).reshape(f) - mean * scale
    scale_w = jnp.tile(scale.reshape(1, f), (1, fold))
    shift_w = jnp.tile(shift.reshape(1, f), (1, fold))

    # Pass 2: lane-dense streaming FMA.
    yw = _normalize_pass(xw, scale_w, shift_w, n_tile, f_tile, vmem_limit)
    return yw.reshape(n, f)


def bn_forward(x, gamma, beta, *, time_aware, max_rows=None):
    """Pallas equivalent of BN(feature_dim, time_aware).forward(x) (training).

    `max_rows` is a test/tuning knob: when set, the fused path is bypassed and
    the streaming-path row tile is capped (exercises chunked stats/partial
    tiles at small shapes).
    """
    budgets = _hw_budgets()
    if time_aware and x.ndim == 3:
        b, t, f = x.shape
        # PyTorch: permute to (B,F,T), BN reduces over (B,T) per channel,
        # permute back == row reduction on the (B*T, F) slab.
        y2d = _bn_2d(x.reshape(b * t, f), gamma, beta,
                     max_rows=max_rows, **budgets)
        return y2d.reshape(b, t, f)
    return _bn_2d(x, gamma, beta, max_rows=max_rows, **budgets)


# --------------------------------------------------------------------------- #
# Reference + tests
# --------------------------------------------------------------------------- #
def _bn_reference(x, gamma, beta, *, time_aware):
    axes = (0, 1) if (time_aware and x.ndim == 3) else (0,)
    xf = x.astype(jnp.float32)
    mean = jnp.mean(xf, axis=axes, keepdims=True)
    var = jnp.mean((xf - mean) ** 2, axis=axes, keepdims=True)
    y = (xf - mean) / jnp.sqrt(var + EPS) * gamma + beta
    return y.astype(x.dtype)


if __name__ == "__main__":
    key = jax.random.PRNGKey(0)
    k1, k2, k3, k4, k5, k6 = jax.random.split(key, 6)

    B, T, F = 2, 8, 32
    gamma = jnp.ones((F,), jnp.float32) + 0.1 * jax.random.normal(k3, (F,), jnp.float32)
    beta = 0.1 * jax.random.normal(k4, (F,), jnp.float32)

    # Case 1: time-aware sequence input (B, T, F) -> fused path.
    x_seq = jax.random.normal(k1, (B, T, F), jnp.float32)
    y_seq = jax.block_until_ready(bn_forward(x_seq, gamma, beta, time_aware=True))
    ref_seq = _bn_reference(x_seq, gamma, beta, time_aware=True)
    assert y_seq.shape == (B, T, F)
    assert jnp.allclose(y_seq, ref_seq, atol=1e-4, rtol=1e-4)

    # Case 2: vector input (B, F) -> fused path.
    x_vec = jax.random.normal(k2, (B, F), jnp.float32)
    y_vec = jax.block_until_ready(bn_forward(x_vec, gamma, beta, time_aware=False))
    ref_vec = _bn_reference(x_vec, gamma, beta, time_aware=False)
    assert y_vec.shape == (B, F)
    assert jnp.allclose(y_vec, ref_vec, atol=1e-4, rtol=1e-4)

    # Case 3: streaming two-pass path with chunked stats (nc=2) and a partial
    # last row tile (N = 210, tile = 64).
    x_big = jax.random.normal(k5, (3, 70, F), jnp.float32)
    y_big = jax.block_until_ready(
        bn_forward(x_big, gamma, beta, time_aware=True, max_rows=64))
    ref_big = _bn_reference(x_big, gamma, beta, time_aware=True)
    assert y_big.shape == (3, 70, F)
    assert jnp.allclose(y_big, ref_big, atol=1e-4, rtol=1e-4)

    # Case 4: streaming path with lane folding (F=32 -> folded lane width 128).
    x_fold = jax.random.normal(k6, (4, 64, F), jnp.float32)   # N = 256, fold = 4
    y_fold = jax.block_until_ready(
        bn_forward(x_fold, gamma, beta, time_aware=True, max_rows=16))
    ref_fold = _bn_reference(x_fold, gamma, beta, time_aware=True)
    assert y_fold.shape == (4, 64, F)
    assert jnp.allclose(y_fold, ref_fold, atol=1e-4, rtol=1e-4)

    # Case 5: fused path with >= 2 parallel lane-dense F tiles (megacore).
    F2 = 256
    gamma2 = jnp.ones((F2,), jnp.float32)
    beta2 = jnp.zeros((F2,), jnp.float32)
    x_wide = jax.random.normal(k5, (4, 8, F2), jnp.float32)
    y_wide = jax.block_until_ready(bn_forward(x_wide, gamma2, beta2, time_aware=True))
    ref_wide = _bn_reference(x_wide, gamma2, beta2, time_aware=True)
    assert y_wide.shape == (4, 8, F2)
    assert jnp.allclose(y_wide, ref_wide, atol=1e-4, rtol=1e-4)

    print("KERNEL_OK")
</pallas_src>

<mosaic_0001>
module attributes {stable_mosaic.version = 11 : i64} {
  func.func @_fused_kernel(%arg0: i32, %arg1: memref<16x32xf32, #tpu.memory_space<vmem>>, %arg2: memref<1x32xf32, #tpu.memory_space<vmem>>, %arg3: memref<1x32xf32, #tpu.memory_space<vmem>>, %arg4: memref<16x32xf32, #tpu.memory_space<vmem>>) attributes {dimension_semantics = [#tpu.dimension_semantics<parallel>], iteration_bounds = array<i64: 1>, scalar_prefetch = 0 : i64, scratch_operands = 0 : i64, tpu.core_type = #tpu.core_type<tc>, window_params = [{transform_indices = @transform_0, window_bounds = array<i64: 16, 32>}, {transform_indices = @transform_1, window_bounds = array<i64: 1, 32>}, {transform_indices = @transform_2, window_bounds = array<i64: 1, 32>}, {transform_indices = @transform_3, window_bounds = array<i64: 16, 32>}]} {
    %c0 = arith.constant 0 : index
    %c0_0 = arith.constant 0 : index
    %0 = vector.load %arg1[%c0, %c0_0] : memref<16x32xf32, #tpu.memory_space<vmem>>, vector<16x32xf32>
    %cst = arith.constant dense<0.000000e+00> : vector<32xf32>
    %1 = vector.multi_reduction <add>, %0, %cst [0] : vector<16x32xf32> to vector<32xf32>
    %2 = vector.shape_cast %1 : vector<32xf32> to vector<1x32xf32>
    %cst_1 = arith.constant 6.250000e-02 : f32
    %3 = vector.broadcast %cst_1 : f32 to vector<1x32xf32>
    %4 = arith.mulf %2, %3 : vector<1x32xf32>
    %5 = vector.broadcast %4 : vector<1x32xf32> to vector<16x32xf32>
    %6 = arith.subf %0, %5 : vector<16x32xf32>
    %7 = arith.mulf %6, %6 : vector<16x32xf32>
    %cst_2 = arith.constant dense<0.000000e+00> : vector<32xf32>
    %8 = vector.multi_reduction <add>, %7, %cst_2 [0] : vector<16x32xf32> to vector<32xf32>
    %9 = vector.shape_cast %8 : vector<32xf32> to vector<1x32xf32>
    %cst_3 = arith.constant 6.250000e-02 : f32
    %10 = vector.broadcast %cst_3 : f32 to vector<1x32xf32>
    %11 = arith.mulf %9, %10 : vector<1x32xf32>
    %c0_4 = arith.constant 0 : index
    %c0_5 = arith.constant 0 : index
    %12 = vector.load %arg2[%c0_4, %c0_5] : memref<1x32xf32, #tpu.memory_space<vmem>>, vector<1x32xf32>
    %cst_6 = arith.constant 9.99999974E-6 : f32
    %13 = vector.broadcast %cst_6 : f32 to vector<1x32xf32>
    %14 = arith.addf %11, %13 : vector<1x32xf32>
    %15 = math.rsqrt %14 : vector<1x32xf32>
    %16 = arith.mulf %12, %15 : vector<1x32xf32>
    %17 = vector.broadcast %16 : vector<1x32xf32> to vector<16x32xf32>
    %18 = arith.mulf %6, %17 : vector<16x32xf32>
    %c0_7 = arith.constant 0 : index
    %c0_8 = arith.constant 0 : index
    %19 = vector.load %arg3[%c0_7, %c0_8] : memref<1x32xf32, #tpu.memory_space<vmem>>, vector<1x32xf32>
    %20 = vector.broadcast %19 : vector<1x32xf32> to vector<16x32xf32>
    %21 = arith.addf %18, %20 : vector<16x32xf32>
    %c0_9 = arith.constant 0 : index
    %c0_10 = arith.constant 0 : index
    %22 = vector.load %arg4[%c0_9, %c0_10] : memref<16x32xf32, #tpu.memory_space<vmem>>, vector<16x32xf32>
    tpu.vector_store %arg4[%c0_9, %c0_10], %21 {strides = array<i32>} : memref<16x32xf32, #tpu.memory_space<vmem>>, vector<16x32xf32>,
    return
  }
  func.func @transform_0(%arg0: i32) -> (i32, i32) {
    %c0_i32 = arith.constant 0 : i32
    %c0_i32_0 = arith.constant 0 : i32
    return %c0_i32, %arg0 : i32, i32
  }
  func.func @transform_1(%arg0: i32) -> (i32, i32) {
    %c0_i32 = arith.constant 0 : i32
    %c0_i32_0 = arith.constant 0 : i32
    return %c0_i32, %arg0 : i32, i32
  }
  func.func @transform_2(%arg0: i32) -> (i32, i32) {
    %c0_i32 = arith.constant 0 : i32
    %c0_i32_0 = arith.constant 0 : i32
    return %c0_i32, %arg0 : i32, i32
  }
  func.func @transform_3(%arg0: i32) -> (i32, i32) {
    %c0_i32 = arith.constant 0 : i32
    %c0_i32_0 = arith.constant 0 : i32
    return %c0_i32, %arg0 : i32, i32
  }
}

</mosaic_0001>

<bundles_post_ra>
// kernel: tpu_custom_call.1
= control target key start
LH: loop header
LB: loop body
LE: loop exit
PB: predicated region body
PF: predicated region fallthrough
CT: control target
= control target key end

     0   :  { %8 = vsyncpa [#allocation3], 0  ;;  %s195_s0 = inlined_call_operand.hbm [shape: f32[16,32], index: 0, kind: input, shape index: {}]   ;;  %s196_s1 = inlined_call_operand.vmem [shape: f32[1,32], index: 1, kind: input, shape index: {}]   ;;  %s197_s2 = inlined_call_operand.vmem [shape: f32[1,32], index: 2, kind: input, shape index: {}]   ;;  %s198_s3 = inlined_call_operand.hbm [shape: f32[16,32], index: 3, kind: output, shape index: {}]  }
   0x1   :  { %9 = vsyncpa [#allocation4], 0  ;;  %s147_s12 = smov [#allocation2]  }
   0x2   :  { %s15_s13 = sshll.u32 %s147_s12, 4  ;;  %s16_s13 = int_to_ptr.vmem [resolvable:$true] %s15_s13 }
   0x3   :  { %s111_s14 = scalar_lea.vmem %s16_s13, 256  ;;  %p116_p1 = scmp.lt.s32.totalorder %s16_s13, %s16_s13 }
   0x4   :  { %p112_p0 = scmp.ne.s32.totalorder %s16_s13, %s111_s14  ;;  %p117_p2 = scmp.lt.s32.totalorder %s111_s14, %s111_s14 }
   0x6   :  { %p118_p3 = por %p117_p2, %p116_p1 }
   0x8   :  { %p119_p4 = pnand %p118_p3, %p112_p0 }
   0xa   :  { %122 = shalt.err (!%p119_p4)
}
   0xb   :  { %s148_s15 = smov 128   ;;  %s149_s16 = smov 8  }
   0xc   :  { %21 = dma.hbm_to_vmem [thread:$0]  %s195_s0, 256, %s16_s13, [#allocation3], %s148_s15, %s148_s15, %s149_s16  }
   0xd   :  { %143 = dma.done.wait [#allocation3], 256  }
   0xe   :  { %144 = vsyncadd [#allocation3], 4294967040  ;;  %vm31_vm0 = vcmask 261120   ;;  %v29_v0 = vld [vmem:[#allocation2] sm:$0xff]  ;;  %v30_v1 = vld [vmem:[#allocation2 + $0x8] sm:$0xff]  ;;  %v61_v27 = vlaneseq  ;;  %s150_s22 = smov [#allocation5]  }
   0xf   :  { %v32_v2 = vsel %vm31_vm0, %v29_v0, 0.0  ;;  %v33_v3 = vsel %vm31_vm0, %v30_v1, 0.0  ;;  %v56_v29 = vld [vmem:[%s196_s1] sm:$0x1]  ;;  %s84_s23 = sshll.u32 %s150_s22, 4  ;;  %s85_s23 = int_to_ptr.vmem [resolvable:$true] %s84_s23 }
  0x10   :  { %v34_v4 = vadd.f32 %v33_v3, %v32_v2  ;;  %v62_v28 = vshrl.u32 %v61_v27, 7  ;;  %v96_v34 = vld [vmem:[%s197_s2] ss:$0 sm:$0xff]  ;;  %s123_s1 = scalar_lea.vmem %s85_s23, 256  ;;  %p128_p6 = scmp.lt.s32.totalorder %s85_s23, %s85_s23 }
  0x11   :  { %p124_p5 = scmp.ne.s32.totalorder %s85_s23, %s123_s1  ;;  %p129_p7 = scmp.lt.s32.totalorder %s123_s1, %s123_s1 }
  0x12   :  { %v35_v5 = vrot.slane %v34_v4, 4  ;;  %v63_v30 = vsub.s32 0, %v62_v28 }
  0x13   :  { %p130_p8 = por %p129_p7, %p128_p6 }
  0x14   :  { %v36_v6 = vadd.f32 %v35_v5, %v34_v4 }
  0x15   :  { %p131_p9 = pnand %p130_p8, %p124_p5 }
  0x16   :  { %v37_v7 = vrot.slane %v36_v6, 2 }
  0x18   :  { %v38_v8 = vadd.f32 %v37_v7, %v36_v6 }
  0x1a   :  { %v39_v9 = vrot.slane %v38_v8, 1 }
  0x1c   :  { %v40_v10 = vadd.f32 %v39_v9, %v38_v8 }
  0x1e   :  { %v41_v11 = vmul.f32 0.0625, %v40_v10 }
  0x20   :  { %v42_v12 = vsub.f32 %v29_v0, %v41_v11  ;;  %v43_v13 = vsub.f32 %v30_v1, %v41_v11 }
  0x22   :  { %v44_v14 = vmul.f32 %v42_v12, %v42_v12  ;;  %v45_v15 = vmul.f32 %v43_v13, %v43_v13 }
  0x24   :  { %v46_v16 = vsel %vm31_vm0, %v44_v14, 0.0  ;;  %v47_v17 = vsel %vm31_vm0, %v45_v15, 0.0 }
  0x25   :  { %v48_v18 = vadd.f32 %v47_v17, %v46_v16 }
  0x27   :  { %v49_v19 = vrot.slane %v48_v18, 4 }
  0x29   :  { %v50_v20 = vadd.f32 %v49_v19, %v48_v18 }
  0x2b   :  { %v51_v21 = vrot.slane %v50_v20, 2 }
  0x2d   :  { %v52_v22 = vadd.f32 %v51_v21, %v50_v20 }
  0x2f   :  { %v53_v23 = vrot.slane %v52_v22, 1 }
  0x31   :  { %v54_v24 = vadd.f32 %v53_v23, %v52_v22 }
  0x33   :  { %v55_v25 = vmul.f32 0.0625, %v54_v24 }
  0x35   :  { %v57_v26 = vadd.f32 1e-05, %v55_v25 }
  0x37   :  { %101 = vrsqrt.f32 %v57_v26 }
  0x44   :  { %v102_v31 = vpop.eup %101 }
  0x45   :  { %v59_v32 = vmul.f32 %v102_v31, %v56_v29 }
  0x47   :  { %v64_v33 = vrot.slane %v59_v32, %v63_v30 }
  0x49   :  { %v66_v35 = vmul.f32 %v64_v33, %v42_v12  ;;  %v67_v36 = vmul.f32 %v64_v33, %v43_v13 }
  0x4b   :  { %v75_v37 = vadd.f32 %v96_v34, %v66_v35  ;;  %v76_v38 = vadd.f32 %v96_v34, %v67_v36 }
  0x4d   :  { %77 = vst.msk [vmem:[#allocation5] sm:$0xff] %vm31_vm0, %v75_v37  ;;  %78 = vst.msk [vmem:[#allocation5 + $0x8] sm:$0xff] %vm31_vm0, %v76_v38 }
  0x4e   :  { %134 = shalt.err (!%p131_p9)
}
  0x4f   :  { %90 = dma.vmem_to_hbm [thread:$0]  %s85_s23, 256, %s198_s3, [#allocation4], %s148_s15, %s148_s15, %s149_s16  }
  0x50   :  { %145 = dma.done.wait [#allocation4], 256  }
  0x51   :  { %146 = vsyncadd [#allocation4], 4294967040 }
  0x52   :  { %94 = vsyncpa [#allocation3], 1 }
  0x53   :  { %95 = vsyncpa [#allocation4], 1 }

</bundles_post_ra>
